<compile_context>
chip_gen: v7x
topology: tpu7x:2x2x1
jax: 0.10.0
libtpu: 0.0.40
codegen_flags: <defaults>
</compile_context>

<pallas_src>
from functools import partial

import numpy as np
import jax
import jax.numpy as jnp
from jax.experimental import pallas as pl
from jax.experimental.pallas import tpu as pltpu

N_EVENTS = 16      # module-level constant in the reference code
MASK_AFTER = 1     # NoiseModel(..., mask_after=1) in GenerateImpulse.__init__


# -----------------------------------------------------------------------------
# The single fused kernel
# -----------------------------------------------------------------------------
def _make_fused_kernel(n_up1, n_up2, window, n_samples):
    """Whole GenerateImpulse forward for a block of TN (batch*event) rows.

    Live rows of every activation are carried concatenated along lanes
    ((TN, 3C) for the to_frames chain, (TN, 2C) for the noise-model chain) so
    every conv layer is exactly one MXU dot against a pre-fused block matrix.
    """
    def kernel(x_ref, noise_ref, envw_ref, envb_ref, interp_ref,
               bw_ref, bb_ref, tfw_ref, tfb_ref, tffw_ref, tffb_ref,
               nmw_ref, nmb_ref, nmfw_ref, nmfb_ref, fcat_ref, irc_ref,
               out_ref):
        def dot(a, b):
            return jnp.dot(a, b, preferred_element_type=jnp.float32)

        def leaky(v):
            return jnp.where(v > 0, v, 0.2 * v)

        x = x_ref[...]                                        # (TN, latent)

        # envelope: first `window` samples of F.interpolate(to_env(x)**2)
        ef = dot(x, envw_ref[...]) + envb_ref[...]            # (TN, n_frames)
        env_win = dot(ef * ef, interp_ref[...])               # (TN, window)

        # to_frames ConvUpsample — live rows 0..2 concatenated: (TN, 3C)
        r = dot(x, bw_ref[...]) + bb_ref[...]
        for l in range(n_up1):                                # fused taps
            r = leaky(dot(r, tfw_ref[l]) + tfb_ref[l])
        # final Conv1d(C, C, 3, 1, 1) — live rows 0..1: (TN, 2C)
        c = dot(r, tffw_ref[...]) + tffb_ref[...]

        # noise_model.upsample ConvUpsample — rows 0..1 only
        for l in range(n_up2):
            c = leaky(dot(c, nmw_ref[l]) + nmb_ref[l])
        # final Conv1d(C, n_coeffs, 3, 1, 1), spectral frame 0 only
        g = jax.nn.sigmoid(dot(c, nmfw_ref[...]) + nmfb_ref[...])
        g = g * g                                             # (TN, n_coeffs)

        # rFFT of white-noise frame 0 (fused Re|Im bases), spectral filter,
        # irFFT with the Hann window folded into the synthesis bases.
        nrni = dot(noise_ref[...], fcat_ref[...])             # (TN, 2*n_coeffs)
        spec = jnp.concatenate([g, g], axis=1) * nrni
        frame = dot(spec, irc_ref[...])                       # (TN, window)

        # samples >= window are exactly zero (mask_after == 1)
        out_ref[:, :window] = frame * env_win
        out_ref[:, window:] = jnp.zeros(
            (out_ref.shape[0], n_samples - window), jnp.float32)

    return kernel


# -----------------------------------------------------------------------------
# Precomputed constants
# -----------------------------------------------------------------------------
def _interp_matrix_cols(n_in, n_out, n_cols):
    # First n_cols columns of the F.interpolate(mode='linear',
    # align_corners=False) matrix mapping n_in frames -> n_out samples.
    i = np.arange(n_cols, dtype=np.float64)
    src = np.clip((i + 0.5) * (n_in / n_out) - 0.5, 0.0, n_in - 1)
    i0 = np.floor(src).astype(np.int64)
    i1 = np.minimum(i0 + 1, n_in - 1)
    w = (src - i0).astype(np.float32)
    M = np.zeros((n_in, n_cols), np.float32)
    cols = np.arange(n_cols)
    M[i0, cols] += 1.0 - w
    M[i1, cols] += w
    return jnp.asarray(M)


def _spectral_bases(window):
    """(window, 2K) rFFT analysis basis and (2K, window) Hann-folded irFFT
    synthesis basis (K = n_coeffs), ortho normalization, periodic Hann."""
    n_coeffs = window // 2 + 1
    t = np.arange(window, dtype=np.float64)
    hann = 0.5 * (1.0 - np.cos(2.0 * np.pi * t / window))
    # analysis: noise @ fcat == [Re, Im] of rfft(noise, norm='ortho')
    E = np.fft.rfft(np.eye(window), axis=-1, norm="ortho")
    fcat = np.concatenate([np.real(E), np.imag(E)], axis=1).astype(np.float32)
    # synthesis with Hann folded in: [re|im] @ irc == irfft(re + i*im) * hann
    eye = np.eye(n_coeffs)
    ir = np.fft.irfft(eye, n=window, axis=-1, norm="ortho") * hann
    ii = np.fft.irfft(1j * eye, n=window, axis=-1, norm="ortho") * hann
    irc = np.concatenate([ir, ii], axis=0).astype(np.float32)
    return jnp.asarray(fcat), jnp.asarray(irc)


# -----------------------------------------------------------------------------
# Parameters (same layout / init as the previous version)
# -----------------------------------------------------------------------------
def init_params(key, latent_dim, channels, n_samples):
    n_frames = n_samples // 256
    n_noise_frames = n_frames * 4
    window = 2 * (n_samples // n_noise_frames)
    n_coeffs = window // 2 + 1

    def nrm(k, shape, fan_in):
        return jax.random.normal(k, shape, jnp.float32) / np.sqrt(fan_in)

    ki = iter(jax.random.split(key, 64))
    p = {}
    # to_env = nn.Linear(latent_dim, n_frames)
    p["env_w"] = nrm(next(ki), (latent_dim, n_frames), latent_dim)
    p["env_b"] = nrm(next(ki), (n_frames,), latent_dim)
    # to_frames = ConvUpsample(latent_dim, channels, 4 -> n_frames, out=channels)
    p["begin_w"] = nrm(next(ki), (latent_dim, channels * 4), latent_dim)
    p["begin_b"] = nrm(next(ki), (channels * 4,), latent_dim)
    n_up1 = int(np.log2(n_frames) - np.log2(4))
    p["tf_layers"] = [(nrm(next(ki), (channels, channels, 4), channels * 4),
                       nrm(next(ki), (channels,), channels * 4)) for _ in range(n_up1)]
    p["tf_final_w"] = nrm(next(ki), (channels, channels, 3), channels * 3)
    p["tf_final_b"] = nrm(next(ki), (channels,), channels * 3)
    # noise_model.upsample = ConvUpsample(channels, channels, n_frames -> 4*n_frames,
    #                                     out_channels=n_coeffs, from_latent=False)
    n_up2 = int(np.log2(n_noise_frames) - np.log2(n_frames))
    p["nm_layers"] = [(nrm(next(ki), (channels, channels, 4), channels * 4),
                       nrm(next(ki), (channels,), channels * 4)) for _ in range(n_up2)]
    p["nm_final_w"] = nrm(next(ki), (n_coeffs, channels, 3), channels * 3)
    p["nm_final_b"] = nrm(next(ki), (n_coeffs,), channels * 3)
    return p


# -----------------------------------------------------------------------------
# One-time weight fusion (host side, outside the jitted forward)
# -----------------------------------------------------------------------------
def fuse_params(params, channels, n_samples):
    C = channels
    n_frames = n_samples // 256
    window = 2 * (n_samples // (n_frames * 4))
    n_coeffs = window // 2 + 1
    f32 = jnp.float32
    Z = jnp.zeros((C, C), f32)

    # ConvTranspose1d(C,C,4,2,1)+LeakyReLU on live rows 0..2 -> (3C,3C) block
    #   o0 = r0@W1 ; o1 = r0@W2 + r1@W0 ; o2 = r0@W3 + r1@W1
    def tf_block(W, b):
        Wk = [W[:, :, k].astype(f32) for k in range(4)]
        M = jnp.concatenate([
            jnp.concatenate([Wk[1], Wk[2], Wk[3]], axis=1),
            jnp.concatenate([Z,     Wk[0], Wk[1]], axis=1),
            jnp.zeros((C, 3 * C), f32)], axis=0)
        return M, jnp.tile(b.astype(f32), 3).reshape(1, 3 * C)

    # Same layer on live rows 0..1 -> (2C,2C) block
    def nm_block(W, b):
        Wk = [W[:, :, k].astype(f32) for k in range(4)]
        M = jnp.concatenate([
            jnp.concatenate([Wk[1], Wk[2]], axis=1),
            jnp.concatenate([Z,     Wk[0]], axis=1)], axis=0)
        return M, jnp.tile(b.astype(f32), 2).reshape(1, 2 * C)

    tf = [tf_block(W, b) for (W, b) in params["tf_layers"]]
    nm = [nm_block(W, b) for (W, b) in params["nm_layers"]]
    assert len(tf) >= 1 and len(nm) >= 1

    # to_frames final Conv1d(C,C,3,1,1), rows 0..1: c0=r0@V1+r1@V2, c1=r0@V0+r1@V1+r2@V2
    V = [params["tf_final_w"][:, :, k].T.astype(f32) for k in range(3)]
    tff_w = jnp.concatenate([
        jnp.concatenate([V[1], V[0]], axis=1),
        jnp.concatenate([V[2], V[1]], axis=1),
        jnp.concatenate([Z,    V[2]], axis=1)], axis=0)            # (3C, 2C)
    tff_b = jnp.tile(params["tf_final_b"].astype(f32), 2).reshape(1, 2 * C)

    # noise-model final Conv1d(C,n_coeffs,3,1,1), frame 0: g0 = c0@U1 + c1@U2
    U1 = params["nm_final_w"][:, :, 1].T.astype(f32)
    U2 = params["nm_final_w"][:, :, 2].T.astype(f32)
    nmf_w = jnp.concatenate([U1, U2], axis=0)                      # (2C, n_coeffs)
    nmf_b = params["nm_final_b"].astype(f32).reshape(1, n_coeffs)

    # begin Linear rearranged so time-row t of the (4, C) start seq is x @ W_t
    begin_w = jnp.concatenate(
        [params["begin_w"][:, t::4] for t in range(3)], axis=1).astype(f32)
    begin_b = jnp.concatenate(
        [params["begin_b"][t::4] for t in range(3)]).reshape(1, 3 * C).astype(f32)

    fcat, irc = _spectral_bases(window)

    return dict(
        env_w=params["env_w"].astype(f32),
        env_b=params["env_b"].reshape(1, n_frames).astype(f32),
        interp=_interp_matrix_cols(n_frames, n_samples, window),
        begin_w=begin_w, begin_b=begin_b,
        tf_w=jnp.stack([m for m, _ in tf]),                        # (n_up1, 3C, 3C)
        tf_b=jnp.stack([b for _, b in tf]),                        # (n_up1, 1, 3C)
        tff_w=tff_w, tff_b=tff_b,
        nm_w=jnp.stack([m for m, _ in nm]),                        # (n_up2, 2C, 2C)
        nm_b=jnp.stack([b for _, b in nm]),                        # (n_up2, 1, 2C)
        nmf_w=nmf_w, nmf_b=nmf_b,
        fcat=fcat, irc=irc,
    )


# -----------------------------------------------------------------------------
# Row-tile selection
# -----------------------------------------------------------------------------
def _pick_row_tile(n_rows, n_samples):
    """Largest row tile: whole batch in one grid step unless the double-buffered
    (TN, n_samples) f32 output block would crowd VMEM.  TN | n_rows, TN % 8 == 0
    (n_rows = batch * 16 is always a multiple of 8)."""
    budget = 20 * 2 ** 20                       # stay under the scoped VMEM default
    cap = max(8, budget // (2 * 4 * n_samples))
    if n_rows <= cap:
        return n_rows
    t = (min(cap, n_rows) // 8) * 8
    while t > 8 and n_rows % t != 0:
        t -= 8
    return t if (t >= 8 and n_rows % t == 0) else n_rows


def _has_two_tensorcores():
    try:
        return "v7" in jax.devices()[0].device_kind.lower()
    except Exception:
        return False


# -----------------------------------------------------------------------------
# Forward pass
# -----------------------------------------------------------------------------
@partial(jax.jit, static_argnames=("n_samples",))
def generate_impulse(fused, x, noise_key, n_samples):
    # x: (B, n_events, latent_dim) f32
    B, E, latent_dim = x.shape
    assert E == N_EVENTS
    n_frames = n_samples // 256
    hop = n_samples // (n_frames * 4)
    window = hop * 2
    assert MASK_AFTER == 1 and window < n_samples
    N = B * E
    xf = x.reshape(N, latent_dim).astype(jnp.float32)

    # With mask_after == 1 only spectral frame 0 survives, so only the first
    # `window` white-noise samples matter; their rFFT is done inside the kernel.
    noise = jax.random.uniform(noise_key, (N, window), jnp.float32, -1.0, 1.0)

    n_up1 = int(fused["tf_w"].shape[0])
    n_up2 = int(fused["nm_w"].shape[0])

    TN = _pick_row_tile(N, n_samples)
    # v7x has 2 TensorCores: keep an even number of "parallel" grid steps.
    if _has_two_tensorcores() and (N // TN) % 2 != 0 and TN % 2 == 0 \
            and (TN // 2) % 8 == 0:
        TN //= 2
    assert N % TN == 0
    grid = (N // TN,)

    def rows_spec(width):
        return pl.BlockSpec((TN, width), lambda i: (i, 0))

    def fixed_spec(a):
        if a.ndim == 2:
            return pl.BlockSpec(a.shape, lambda i: (0, 0))
        return pl.BlockSpec(a.shape, lambda i: (0, 0, 0))

    fixed_names = ["env_w", "env_b", "interp", "begin_w", "begin_b",
                   "tf_w", "tf_b", "tff_w", "tff_b",
                   "nm_w", "nm_b", "nmf_w", "nmf_b", "fcat", "irc"]
    fixed_ops = [fused[k] for k in fixed_names]

    in_specs = [rows_spec(latent_dim), rows_spec(window)] + \
               [fixed_spec(a) for a in fixed_ops]

    kernel = _make_fused_kernel(n_up1, n_up2, window, n_samples)

    out = pl.pallas_call(
        kernel,
        out_shape=jax.ShapeDtypeStruct((N, n_samples), jnp.float32),
        grid=grid,
        in_specs=in_specs,
        out_specs=pl.BlockSpec((TN, n_samples), lambda i: (i, 0)),
        compiler_params=pltpu.CompilerParams(
            dimension_semantics=("parallel",)),
    )(xf, noise, *fixed_ops)

    return out.reshape(B, E, n_samples)


if __name__ == "__main__":
    latent_dim = 16
    channels = 8
    n_samples = 2048     # reference uses 16384/32768; scaled down, keeps n_frames = n_samples // 256
    batch = 2

    key = jax.random.PRNGKey(0)
    pkey, xkey, nkey = jax.random.split(key, 3)
    params = init_params(pkey, latent_dim, channels, n_samples)
    fused = fuse_params(params, channels, n_samples)
    x = jax.random.normal(xkey, (batch, N_EVENTS, latent_dim), jnp.float32)

    out = generate_impulse(fused, x, nkey, n_samples=n_samples)
    out = jax.block_until_ready(out)
    assert out.shape == (batch, N_EVENTS, n_samples)
    assert bool(jnp.all(jnp.isfinite(out)))
    print("KERNEL_OK")
</pallas_src>

<mosaic_0001>
module attributes {stable_mosaic.version = 11 : i64} {
  func.func @kernel(%arg0: i32, %arg1: memref<32x16xf32, #tpu.memory_space<vmem>>, %arg2: memref<32x128xf32, #tpu.memory_space<vmem>>, %arg3: memref<16x8xf32, #tpu.memory_space<vmem>>, %arg4: memref<1x8xf32, #tpu.memory_space<vmem>>, %arg5: memref<8x128xf32, #tpu.memory_space<vmem>>, %arg6: memref<16x24xf32, #tpu.memory_space<vmem>>, %arg7: memref<1x24xf32, #tpu.memory_space<vmem>>, %arg8: memref<1x24x24xf32, #tpu.memory_space<vmem>>, %arg9: memref<1x1x24xf32, #tpu.memory_space<vmem>>, %arg10: memref<24x16xf32, #tpu.memory_space<vmem>>, %arg11: memref<1x16xf32, #tpu.memory_space<vmem>>, %arg12: memref<2x16x16xf32, #tpu.memory_space<vmem>>, %arg13: memref<2x1x16xf32, #tpu.memory_space<vmem>>, %arg14: memref<16x65xf32, #tpu.memory_space<vmem>>, %arg15: memref<1x65xf32, #tpu.memory_space<vmem>>, %arg16: memref<128x130xf32, #tpu.memory_space<vmem>>, %arg17: memref<130x128xf32, #tpu.memory_space<vmem>>, %arg18: memref<32x2048xf32, #tpu.memory_space<vmem>>) attributes {dimension_semantics = [#tpu.dimension_semantics<parallel>], iteration_bounds = array<i64: 1>, scalar_prefetch = 0 : i64, scratch_operands = 0 : i64, tpu.core_type = #tpu.core_type<tc>, window_params = [{transform_indices = @transform_0, window_bounds = array<i64: 32, 16>}, {transform_indices = @transform_1, window_bounds = array<i64: 32, 128>}, {pipeline_mode = #tpu.pipeline_mode<synchronous>, transform_indices = @transform_2, window_bounds = array<i64: 16, 8>}, {pipeline_mode = #tpu.pipeline_mode<synchronous>, transform_indices = @transform_3, window_bounds = array<i64: 1, 8>}, {pipeline_mode = #tpu.pipeline_mode<synchronous>, transform_indices = @transform_4, window_bounds = array<i64: 8, 128>}, {pipeline_mode = #tpu.pipeline_mode<synchronous>, transform_indices = @transform_5, window_bounds = array<i64: 16, 24>}, {pipeline_mode = #tpu.pipeline_mode<synchronous>, transform_indices = @transform_6, window_bounds = array<i64: 1, 24>}, {pipeline_mode = #tpu.pipeline_mode<synchronous>, transform_indices = @transform_7, window_bounds = array<i64: 1, 24, 24>}, {pipeline_mode = #tpu.pipeline_mode<synchronous>, transform_indices = @transform_8, window_bounds = array<i64: 1, 1, 24>}, {pipeline_mode = #tpu.pipeline_mode<synchronous>, transform_indices = @transform_9, window_bounds = array<i64: 24, 16>}, {pipeline_mode = #tpu.pipeline_mode<synchronous>, transform_indices = @transform_10, window_bounds = array<i64: 1, 16>}, {pipeline_mode = #tpu.pipeline_mode<synchronous>, transform_indices = @transform_11, window_bounds = array<i64: 2, 16, 16>}, {pipeline_mode = #tpu.pipeline_mode<synchronous>, transform_indices = @transform_12, window_bounds = array<i64: 2, 1, 16>}, {pipeline_mode = #tpu.pipeline_mode<synchronous>, transform_indices = @transform_13, window_bounds = array<i64: 16, 65>}, {pipeline_mode = #tpu.pipeline_mode<synchronous>, transform_indices = @transform_14, window_bounds = array<i64: 1, 65>}, {pipeline_mode = #tpu.pipeline_mode<synchronous>, transform_indices = @transform_15, window_bounds = array<i64: 128, 130>}, {pipeline_mode = #tpu.pipeline_mode<synchronous>, transform_indices = @transform_16, window_bounds = array<i64: 130, 128>}, {transform_indices = @transform_17, window_bounds = array<i64: 32, 2048>}]} {
    %c0 = arith.constant 0 : index
    %c0_0 = arith.constant 0 : index
    %0 = vector.load %arg1[%c0, %c0_0] : memref<32x16xf32, #tpu.memory_space<vmem>>, vector<32x16xf32>
    %c0_1 = arith.constant 0 : index
    %c0_2 = arith.constant 0 : index
    %1 = vector.load %arg3[%c0_1, %c0_2] : memref<16x8xf32, #tpu.memory_space<vmem>>, vector<16x8xf32>
    %cst = arith.constant dense<0.000000e+00> : vector<32x8xf32>
    %2 = tpu.matmul %0, %1, %cst {dimension_numbers = #tpu.dot_dimension_numbers<[1], [0], [0], [1], [0, 0, 1, 1], [], []>} : vector<32x16xf32>, vector<16x8xf32>, vector<32x8xf32> -> vector<32x8xf32>
    %c0_3 = arith.constant 0 : index
    %c0_4 = arith.constant 0 : index
    %3 = vector.load %arg4[%c0_3, %c0_4] : memref<1x8xf32, #tpu.memory_space<vmem>>, vector<1x8xf32>
    %4 = vector.broadcast %3 : vector<1x8xf32> to vector<32x8xf32>
    %5 = arith.addf %2, %4 : vector<32x8xf32>
    %6 = arith.mulf %5, %5 : vector<32x8xf32>
    %c0_5 = arith.constant 0 : index
    %c0_6 = arith.constant 0 : index
    %7 = vector.load %arg5[%c0_5, %c0_6] : memref<8x128xf32, #tpu.memory_space<vmem>>, vector<8x128xf32>
    %cst_7 = arith.constant dense<0.000000e+00> : vector<32x128xf32>
    %8 = tpu.matmul %6, %7, %cst_7 {dimension_numbers = #tpu.dot_dimension_numbers<[1], [0], [0], [1], [0, 0, 1, 1], [], []>} : vector<32x8xf32>, vector<8x128xf32>, vector<32x128xf32> -> vector<32x128xf32>
    %c0_8 = arith.constant 0 : index
    %c0_9 = arith.constant 0 : index
    %9 = vector.load %arg6[%c0_8, %c0_9] : memref<16x24xf32, #tpu.memory_space<vmem>>, vector<16x24xf32>
    %cst_10 = arith.constant dense<0.000000e+00> : vector<32x24xf32>
    %10 = tpu.matmul %0, %9, %cst_10 {dimension_numbers = #tpu.dot_dimension_numbers<[1], [0], [0], [1], [0, 0, 1, 1], [], []>} : vector<32x16xf32>, vector<16x24xf32>, vector<32x24xf32> -> vector<32x24xf32>
    %c0_11 = arith.constant 0 : index
    %c0_12 = arith.constant 0 : index
    %11 = vector.load %arg7[%c0_11, %c0_12] : memref<1x24xf32, #tpu.memory_space<vmem>>, vector<1x24xf32>
    %12 = vector.broadcast %11 : vector<1x24xf32> to vector<32x24xf32>
    %13 = arith.addf %10, %12 : vector<32x24xf32>
    %c0_13 = arith.constant 0 : index
    %c0_14 = arith.constant 0 : index
    %c0_15 = arith.constant 0 : index
    %14 = vector.load %arg8[%c0_13, %c0_14, %c0_15] : memref<1x24x24xf32, #tpu.memory_space<vmem>>, vector<1x24x24xf32>
    %15 = vector.shape_cast %14 : vector<1x24x24xf32> to vector<24x24xf32>
    %cst_16 = arith.constant dense<0.000000e+00> : vector<32x24xf32>
    %16 = tpu.matmul %13, %15, %cst_16 {dimension_numbers = #tpu.dot_dimension_numbers<[1], [0], [0], [1], [0, 0, 1, 1], [], []>} : vector<32x24xf32>, vector<24x24xf32>, vector<32x24xf32> -> vector<32x24xf32>
    %c0_17 = arith.constant 0 : index
    %c0_18 = arith.constant 0 : index
    %c0_19 = arith.constant 0 : index
    %17 = vector.load %arg9[%c0_17, %c0_18, %c0_19] : memref<1x1x24xf32, #tpu.memory_space<vmem>>, vector<1x1x24xf32>
    %18 = vector.shape_cast %17 : vector<1x1x24xf32> to vector<1x24xf32>
    %19 = vector.broadcast %18 : vector<1x24xf32> to vector<32x24xf32>
    %20 = arith.addf %16, %19 : vector<32x24xf32>
    %cst_20 = arith.constant 0.000000e+00 : f32
    %21 = vector.broadcast %cst_20 : f32 to vector<32x24xf32>
    %22 = arith.cmpf ogt, %20, %21 : vector<32x24xf32>
    %cst_21 = arith.constant 2.000000e-01 : f32
    %23 = vector.broadcast %cst_21 : f32 to vector<32x24xf32>
    %24 = arith.mulf %23, %20 : vector<32x24xf32>
    %25 = arith.select %22, %20, %24 : vector<32x24xi1>, vector<32x24xf32>
    %c0_22 = arith.constant 0 : index
    %c0_23 = arith.constant 0 : index
    %26 = vector.load %arg10[%c0_22, %c0_23] : memref<24x16xf32, #tpu.memory_space<vmem>>, vector<24x16xf32>
    %cst_24 = arith.constant dense<0.000000e+00> : vector<32x16xf32>
    %27 = tpu.matmul %25, %26, %cst_24 {dimension_numbers = #tpu.dot_dimension_numbers<[1], [0], [0], [1], [0, 0, 1, 1], [], []>} : vector<32x24xf32>, vector<24x16xf32>, vector<32x16xf32> -> vector<32x16xf32>
    %c0_25 = arith.constant 0 : index
    %c0_26 = arith.constant 0 : index
    %28 = vector.load %arg11[%c0_25, %c0_26] : memref<1x16xf32, #tpu.memory_space<vmem>>, vector<1x16xf32>
    %29 = vector.broadcast %28 : vector<1x16xf32> to vector<32x16xf32>
    %30 = arith.addf %27, %29 : vector<32x16xf32>
    %c0_27 = arith.constant 0 : index
    %c0_28 = arith.constant 0 : index
    %c0_29 = arith.constant 0 : index
    %31 = vector.load %arg12[%c0_27, %c0_28, %c0_29] : memref<2x16x16xf32, #tpu.memory_space<vmem>>, vector<1x16x16xf32>
    %32 = vector.shape_cast %31 : vector<1x16x16xf32> to vector<16x16xf32>
    %cst_30 = arith.constant dense<0.000000e+00> : vector<32x16xf32>
    %33 = tpu.matmul %30, %32, %cst_30 {dimension_numbers = #tpu.dot_dimension_numbers<[1], [0], [0], [1], [0, 0, 1, 1], [], []>} : vector<32x16xf32>, vector<16x16xf32>, vector<32x16xf32> -> vector<32x16xf32>
    %c0_31 = arith.constant 0 : index
    %c0_32 = arith.constant 0 : index
    %c0_33 = arith.constant 0 : index
    %34 = vector.load %arg13[%c0_31, %c0_32, %c0_33] : memref<2x1x16xf32, #tpu.memory_space<vmem>>, vector<1x1x16xf32>
    %35 = vector.shape_cast %34 : vector<1x1x16xf32> to vector<1x16xf32>
    %36 = vector.broadcast %35 : vector<1x16xf32> to vector<32x16xf32>
    %37 = arith.addf %33, %36 : vector<32x16xf32>
    %cst_34 = arith.constant 0.000000e+00 : f32
    %38 = vector.broadcast %cst_34 : f32 to vector<32x16xf32>
    %39 = arith.cmpf ogt, %37, %38 : vector<32x16xf32>
    %cst_35 = arith.constant 2.000000e-01 : f32
    %40 = vector.broadcast %cst_35 : f32 to vector<32x16xf32>
    %41 = arith.mulf %40, %37 : vector<32x16xf32>
    %42 = arith.select %39, %37, %41 : vector<32x16xi1>, vector<32x16xf32>
    %c1 = arith.constant 1 : index
    %c0_36 = arith.constant 0 : index
    %c0_37 = arith.constant 0 : index
    %43 = vector.load %arg12[%c1, %c0_36, %c0_37] : memref<2x16x16xf32, #tpu.memory_space<vmem>>, vector<1x16x16xf32>
    %44 = vector.shape_cast %43 : vector<1x16x16xf32> to vector<16x16xf32>
    %cst_38 = arith.constant dense<0.000000e+00> : vector<32x16xf32>
    %45 = tpu.matmul %42, %44, %cst_38 {dimension_numbers = #tpu.dot_dimension_numbers<[1], [0], [0], [1], [0, 0, 1, 1], [], []>} : vector<32x16xf32>, vector<16x16xf32>, vector<32x16xf32> -> vector<32x16xf32>
    %c1_39 = arith.constant 1 : index
    %c0_40 = arith.constant 0 : index
    %c0_41 = arith.constant 0 : index
    %46 = vector.load %arg13[%c1_39, %c0_40, %c0_41] : memref<2x1x16xf32, #tpu.memory_space<vmem>>, vector<1x1x16xf32>
    %47 = vector.shape_cast %46 : vector<1x1x16xf32> to vector<1x16xf32>
    %48 = vector.broadcast %47 : vector<1x16xf32> to vector<32x16xf32>
    %49 = arith.addf %45, %48 : vector<32x16xf32>
    %cst_42 = arith.constant 0.000000e+00 : f32
    %50 = vector.broadcast %cst_42 : f32 to vector<32x16xf32>
    %51 = arith.cmpf ogt, %49, %50 : vector<32x16xf32>
    %cst_43 = arith.constant 2.000000e-01 : f32
    %52 = vector.broadcast %cst_43 : f32 to vector<32x16xf32>
    %53 = arith.mulf %52, %49 : vector<32x16xf32>
    %54 = arith.select %51, %49, %53 : vector<32x16xi1>, vector<32x16xf32>
    %c0_44 = arith.constant 0 : index
    %c0_45 = arith.constant 0 : index
    %55 = vector.load %arg14[%c0_44, %c0_45] : memref<16x65xf32, #tpu.memory_space<vmem>>, vector<16x65xf32>
    %cst_46 = arith.constant dense<0.000000e+00> : vector<32x65xf32>
    %56 = tpu.matmul %54, %55, %cst_46 {dimension_numbers = #tpu.dot_dimension_numbers<[1], [0], [0], [1], [0, 0, 1, 1], [], []>} : vector<32x16xf32>, vector<16x65xf32>, vector<32x65xf32> -> vector<32x65xf32>
    %c0_47 = arith.constant 0 : index
    %c0_48 = arith.constant 0 : index
    %57 = vector.load %arg15[%c0_47, %c0_48] : memref<1x65xf32, #tpu.memory_space<vmem>>, vector<1x65xf32>
    %58 = vector.broadcast %57 : vector<1x65xf32> to vector<32x65xf32>
    %59 = arith.addf %56, %58 : vector<32x65xf32>
    %60 = arith.negf %59 : vector<32x65xf32>
    %61 = math.exp %60 : vector<32x65xf32>
    %cst_49 = arith.constant 1.000000e+00 : f32
    %62 = vector.broadcast %cst_49 : f32 to vector<32x65xf32>
    %63 = arith.addf %62, %61 : vector<32x65xf32>
    %64 = arith.divf %62, %63 : vector<32x65xf32>
    %65 = arith.mulf %64, %64 : vector<32x65xf32>
    %c0_50 = arith.constant 0 : index
    %c0_51 = arith.constant 0 : index
    %66 = vector.load %arg2[%c0_50, %c0_51] : memref<32x128xf32, #tpu.memory_space<vmem>>, vector<32x128xf32>
    %c0_52 = arith.constant 0 : index
    %c0_53 = arith.constant 0 : index
    %67 = vector.load %arg16[%c0_52, %c0_53] : memref<128x130xf32, #tpu.memory_space<vmem>>, vector<128x130xf32>
    %cst_54 = arith.constant dense<0.000000e+00> : vector<32x130xf32>
    %68 = tpu.matmul %66, %67, %cst_54 {dimension_numbers = #tpu.dot_dimension_numbers<[1], [0], [0], [1], [0, 0, 1, 1], [], []>} : vector<32x128xf32>, vector<128x130xf32>, vector<32x130xf32> -> vector<32x130xf32>
    %69 = tpu.concatenate %65, %65 in 1 : vector<32x65xf32>, vector<32x65xf32> -> vector<32x130xf32>
    %70 = arith.mulf %69, %68 : vector<32x130xf32>
    %c0_55 = arith.constant 0 : index
    %c0_56 = arith.constant 0 : index
    %71 = vector.load %arg17[%c0_55, %c0_56] : memref<130x128xf32, #tpu.memory_space<vmem>>, vector<130x128xf32>
    %cst_57 = arith.constant dense<0.000000e+00> : vector<32x128xf32>
    %72 = tpu.matmul %70, %71, %cst_57 {dimension_numbers = #tpu.dot_dimension_numbers<[1], [0], [0], [1], [0, 0, 1, 1], [], []>} : vector<32x130xf32>, vector<130x128xf32>, vector<32x128xf32> -> vector<32x128xf32>
    %73 = arith.mulf %72, %8 : vector<32x128xf32>
    %c0_58 = arith.constant 0 : index
    %c0_59 = arith.constant 0 : index
    %74 = vector.load %arg18[%c0_58, %c0_59] : memref<32x2048xf32, #tpu.memory_space<vmem>>, vector<32x128xf32>
    tpu.vector_store %arg18[%c0_58, %c0_59], %73 {strides = array<i32>} : memref<32x2048xf32, #tpu.memory_space<vmem>>, vector<32x128xf32>,
    %cst_60 = arith.constant 0.000000e+00 : f32
    %75 = vector.broadcast %cst_60 : f32 to vector<32x1920xf32>
    %c0_61 = arith.constant 0 : index
    %c128 = arith.constant 128 : index
    %76 = vector.load %arg18[%c0_61, %c128] : memref<32x2048xf32, #tpu.memory_space<vmem>>, vector<32x1920xf32>
    tpu.vector_store %arg18[%c0_61, %c128], %75 {strides = array<i32>} : memref<32x2048xf32, #tpu.memory_space<vmem>>, vector<32x1920xf32>,
    return
  }
  func.func @transform_0(%arg0: i32) -> (i32, i32) {
    %c0_i32 = arith.constant 0 : i32
    %c0_i32_0 = arith.constant 0 : i32
    return %arg0, %c0_i32 : i32, i32
  }
  func.func @transform_1(%arg0: i32) -> (i32, i32) {
    %c0_i32 = arith.constant 0 : i32
    %c0_i32_0 = arith.constant 0 : i32
    return %arg0, %c0_i32 : i32, i32
  }
  func.func @transform_2(%arg0: i32) -> (i32, i32) {
    %c0_i32 = arith.constant 0 : i32
    %c0_i32_0 = arith.constant 0 : i32
    %c0_i32_1 = arith.constant 0 : i32
    return %c0_i32, %c0_i32_0 : i32, i32
  }
  func.func @transform_3(%arg0: i32) -> (i32, i32) {
    %c0_i32 = arith.constant 0 : i32
    %c0_i32_0 = arith.constant 0 : i32
    %c0_i32_1 = arith.constant 0 : i32
    return %c0_i32, %c0_i32_0 : i32, i32
  }
  func.func @transform_4(%arg0: i32) -> (i32, i32) {
    %c0_i32 = arith.constant 0 : i32
    %c0_i32_0 = arith.constant 0 : i32
    %c0_i32_1 = arith.constant 0 : i32
    return %c0_i32, %c0_i32_0 : i32, i32
  }
  func.func @transform_5(%arg0: i32) -> (i32, i32) {
    %c0_i32 = arith.constant 0 : i32
    %c0_i32_0 = arith.constant 0 : i32
    %c0_i32_1 = arith.constant 0 : i32
    return %c0_i32, %c0_i32_0 : i32, i32
  }
  func.func @transform_6(%arg0: i32) -> (i32, i32) {
    %c0_i32 = arith.constant 0 : i32
    %c0_i32_0 = arith.constant 0 : i32
    %c0_i32_1 = arith.constant 0 : i32
    return %c0_i32, %c0_i32_0 : i32, i32
  }
  func.func @transform_7(%arg0: i32) -> (i32, i32, i32) {
    %c0_i32 = arith.constant 0 : i32
    %c0_i32_0 = arith.constant 0 : i32
    %c0_i32_1 = arith.constant 0 : i32
    %c0_i32_2 = arith.constant 0 : i32
    return %c0_i32, %c0_i32_0, %c0_i32_1 : i32, i32, i32
  }
  func.func @transform_8(%arg0: i32) -> (i32, i32, i32) {
    %c0_i32 = arith.constant 0 : i32
    %c0_i32_0 = arith.constant 0 : i32
    %c0_i32_1 = arith.constant 0 : i32
    %c0_i32_2 = arith.constant 0 : i32
    return %c0_i32, %c0_i32_0, %c0_i32_1 : i32, i32, i32
  }
  func.func @transform_9(%arg0: i32) -> (i32, i32) {
    %c0_i32 = arith.constant 0 : i32
    %c0_i32_0 = arith.constant 0 : i32
    %c0_i32_1 = arith.constant 0 : i32
    return %c0_i32, %c0_i32_0 : i32, i32
  }
  func.func @transform_10(%arg0: i32) -> (i32, i32) {
    %c0_i32 = arith.constant 0 : i32
    %c0_i32_0 = arith.constant 0 : i32
    %c0_i32_1 = arith.constant 0 : i32
    return %c0_i32, %c0_i32_0 : i32, i32
  }
  func.func @transform_11(%arg0: i32) -> (i32, i32, i32) {
    %c0_i32 = arith.constant 0 : i32
    %c0_i32_0 = arith.constant 0 : i32
    %c0_i32_1 = arith.constant 0 : i32
    %c0_i32_2 = arith.constant 0 : i32
    return %c0_i32, %c0_i32_0, %c0_i32_1 : i32, i32, i32
  }
  func.func @transform_12(%arg0: i32) -> (i32, i32, i32) {
    %c0_i32 = arith.constant 0 : i32
    %c0_i32_0 = arith.constant 0 : i32
    %c0_i32_1 = arith.constant 0 : i32
    %c0_i32_2 = arith.constant 0 : i32
    return %c0_i32, %c0_i32_0, %c0_i32_1 : i32, i32, i32
  }
  func.func @transform_13(%arg0: i32) -> (i32, i32) {
    %c0_i32 = arith.constant 0 : i32
    %c0_i32_0 = arith.constant 0 : i32
    %c0_i32_1 = arith.constant 0 : i32
    return %c0_i32, %c0_i32_0 : i32, i32
  }
  func.func @transform_14(%arg0: i32) -> (i32, i32) {
    %c0_i32 = arith.constant 0 : i32
    %c0_i32_0 = arith.constant 0 : i32
    %c0_i32_1 = arith.constant 0 : i32
    return %c0_i32, %c0_i32_0 : i32, i32
  }
  func.func @transform_15(%arg0: i32) -> (i32, i32) {
    %c0_i32 = arith.constant 0 : i32
    %c0_i32_0 = arith.constant 0 : i32
    %c0_i32_1 = arith.constant 0 : i32
    return %c0_i32, %c0_i32_0 : i32, i32
  }
  func.func @transform_16(%arg0: i32) -> (i32, i32) {
    %c0_i32 = arith.constant 0 : i32
    %c0_i32_0 = arith.constant 0 : i32
    %c0_i32_1 = arith.constant 0 : i32
    return %c0_i32, %c0_i32_0 : i32, i32
  }
  func.func @transform_17(%arg0: i32) -> (i32, i32) {
    %c0_i32 = arith.constant 0 : i32
    %c0_i32_0 = arith.constant 0 : i32
    return %arg0, %c0_i32 : i32, i32
  }
}

</mosaic_0001>

<bundles_post_ra>
// kernel: generate_impulse.1
= control target key start
LH: loop header
LB: loop body
LE: loop exit
PB: predicated region body
PF: predicated region fallthrough
CT: control target
= control target key end

     0   :  { %s2124_s0 = inlined_call_operand.vmem [shape: f32[32,16], index: 0, kind: input, shape index: {}]   ;;  %s2125_s1 = inlined_call_operand.vmem [shape: f32[32,128], index: 1, kind: input, shape index: {}]   ;;  %s2126_s2 = inlined_call_operand.vmem [shape: f32[16,8], index: 2, kind: input, shape index: {}]   ;;  %s2127_s3 = inlined_call_operand.vmem [shape: f32[1,8], index: 3, kind: input, shape index: {}]   ;;  %s2128_s4 = inlined_call_operand.vmem [shape: f32[8,128], index: 4, kind: input, shape index: {}]   ;;  %s2129_s5 = inlined_call_operand.vmem [shape: f32[16,24], index: 5, kind: input, shape index: {}]   ;;  %s2130_s6 = inlined_call_operand.vmem [shape: f32[1,24], index: 6, kind: input, shape index: {}]   ;;  %s2131_s7 = inlined_call_operand.vmem [shape: f32[1,24,24], index: 7, kind: input, shape index: {}]   ;;  %s2132_s8 = inlined_call_operand.vmem [shape: f32[1,1,24], index: 8, kind: input, shape index: {}]   ;;  %s2133_s9 = inlined_call_operand.vmem [shape: f32[24,16], index: 9, kind: input, shape index: {}]   ;;  %s2134_s10 = inlined_call_operand.vmem [shape: f32[1,16], index: 10, kind: input, shape index: {}]   ;;  %s2135_s11 = inlined_call_operand.vmem [shape: f32[2,16,16], index: 11, kind: input, shape index: {}]   ;;  %s2136_s12 = inlined_call_operand.vmem [shape: f32[2,1,16], index: 12, kind: input, shape index: {}]   ;;  %s2137_s13 = inlined_call_operand.vmem [shape: f32[16,65], index: 13, kind: input, shape index: {}]   ;;  %s2138_s14 = inlined_call_operand.vmem [shape: f32[1,65], index: 14, kind: input, shape index: {}]   ;;  %s2139_s15 = inlined_call_operand.vmem [shape: f32[128,130], index: 15, kind: input, shape index: {}]   ;;  %s2140_s16 = inlined_call_operand.vmem [shape: f32[130,128], index: 16, kind: input, shape index: {}]   ;;  %s2141_s17 = inlined_call_operand.hbm [shape: f32[32,2048], index: 17, kind: output, shape index: {}]  }
   0x1   :  { %2144 = sst [smem:[#allocation5_spill]] %s2124_s0 }
   0x2   :  { %2145 = sst [smem:[#allocation6_spill]] %s2125_s1 }
   0x3   :  { %v61_v0 = vld [vmem:[%s2126_s2] sm:$0xff]  ;;  %v62_v1 = vld [vmem:[%s2126_s2 + $0x8] sm:$0xff]  ;;  %s2146_s0 = sld [smem:[#allocation5_spill]]  ;;  %vm70_vm0 = vcmask 130048  }
   0x4   :  { %v1503_v3 = vpack.c.bf16 %v62_v1, %v61_v0 }
   0x9   :  { %v57_v2 = vld [vmem:[%s2146_s0] sm:$0xff] }
   0xa   :  { %1425 = vmatprep.mubr.msk.f32.mxu0 %vm70_vm0, %v57_v2 }
   0xb   :  { %22 = vsyncpa [#allocation3], 0  ;;  %1504 = vmatprep.subr.bf16.mxu0 %v1503_v3  ;;  %v58_v4 = vld [vmem:[%s2146_s0 + $0x8] sm:$0xff]  ;;  %v59_v5 = vld [vmem:[%s2146_s0 + $0x10] sm:$0xff]  ;;  %vm173_vm1 = vcmask 64512   ;;  %vm375_vm2 = vcmask 195584  }
   0xc   :  { %1506 = vmatpush3.bf16.msra.mxu0 %v1503_v3  ;;  %v60_v6 = vld [vmem:[%s2146_s0 + $0x18] sm:$0xff]  ;;  %v172_v7 = vld [vmem:[%s2128_s4] sm:$0xff]  ;;  %v272_v9 = vld [vmem:[%s2129_s5 + $0x8] sm:$0xff]  ;;  %vm1148_vm15 = vcmask 1041408   ;;  %s1635_s1 = smov 65  }
   0xd   :  { %1431 = vmatprep.subr.mxu1 %v172_v7  ;;  %v271_v8 = vld [vmem:[%s2129_s5] sm:$0xff]  ;;  %v366_v25 = vld [vmem:[%s2131_s7 + $0x8] sm:$0xff]  ;;  %v367_v27 = vld [vmem:[%s2131_s7 + $0x10] sm:$0xff] }
   0xe   :  { %1432 = vmatpush3.msra.mxu1 %v172_v7  ;;  %v1507_v10 = vpack.c.bf16 %v272_v9, %v271_v8  ;;  %v1321_v11 = vld [vmem:[%s2127_s3] ss:$0 sm:$0xff]  ;;  %v486_v29 = vld [vmem:[%s2133_s9 + $0x8] sm:$0xff]  ;;  %v487_v44 = vld [vmem:[%s2133_s9 + $0x10] sm:$0xff] }
   0xf   :  { %1426 = vmatmul.mubr.msk.f32.vlgmr.msra.gmra.mrb[0].mxu0 %vm70_vm0, %v58_v4  ;;  %v365_v24 = vld [vmem:[%s2131_s7] sm:$0xff]  ;;  %v593_v46 = vld [vmem:[%s2135_s11 + $0x8] sm:$0xff]  ;;  %v1350_v1 = vld [vmem:[%s2135_s11 + $0x10] sm:$0xff] }
  0x10   :  { %1428 = vmatprep.mubr.msk.f32.mxu0 %vm70_vm0, %v59_v5  ;;  %1508 = vmatprep.subr.bf16.mxu1 %v1507_v10  ;;  %v1511_v26 = vpack.c.bf16 %v366_v25, %v365_v24  ;;  %v485_v28 = vld [vmem:[%s2133_s9] sm:$0xff] }
  0x11   :  { %v1515_v30 = vpack.c.bf16 %v486_v29, %v485_v28  ;;  %v1330_v35 = vld [vmem:[%s2130_s6] ss:$0 sm:$0xff] }
  0x12   :  { %1512 = vmatprep.subr.bf16.mxu0 %v1511_v26  ;;  %v592_v45 = vld [vmem:[%s2135_s11] sm:$0xff] }
  0x13   :  { %1429 = vmatmul.mubr.msk.f32.gmra.mrb[2].mxu0 %vm70_vm0, %v60_v6  ;;  %v1519_v47 = vpack.c.bf16 %v593_v46, %v592_v45  ;;  %v1335_v48 = vld [vmem:[%s2132_s8] ss:$0 sm:$0xff]  ;;  %s2147_s8 = sld [smem:[#allocation6_spill]] }
  0x14   :  { %1514 = vmatpush3.bf16.msra.mxu0 %v1511_v26 }
  0x15   :  { %1453 = vmatprep.subr.mxu0 %v367_v27 }
  0x18   :  { %1454 = vmatpush3.msra.mxu0 %v367_v27 }
  0x19   :  { %1520 = vmatprep.subr.bf16.mxu0 %v1519_v47 }
  0xe2   :  { %v1427_v12 = vpop.f32.mrb[0].mxu0 }
  0xe3   :  { %v155_v13 = vadd.f32 %v1427_v12, %v1321_v11  ;;  %v149_v14 = vpop.f32.mrb[1].mxu0 }
  0xe4   :  { %v150_v15 = vadd.f32 %v1321_v11, %v149_v14  ;;  %v831_v14 = vld [vmem:[%s2137_s13 + $0x8] sm:$0xff] }
  0xe5   :  { %v169_v18 = vmul.f32 %v155_v13, %v155_v13  ;;  %v830_v13 = vld [vmem:[%s2137_s13] sm:$0xff] }
  0xe6   :  { %v168_v16 = vmul.f32 %v150_v15, %v150_v15  ;;  %v1430_v17 = vpop.f32.mrb[2].mxu0  ;;  %v1527_v15 = vpack.c.bf16 %v831_v14, %v830_v13  ;;  %v992_v13 = vld [vmem:[%s2139_s15 + $0xc0] sm:$0xff]  ;;  %v994_v14 = vld [vmem:[%s2139_s15 + $0xd0] sm:$0xff] }
  0xe7   :  { %v165_v19 = vadd.f32 %v1430_v17, %v1321_v11  ;;  %v159_v20 = vpop.f32.mrb[3].mxu0 }
  0xe8   :  { %v160_v21 = vadd.f32 %v1321_v11, %v159_v20  ;;  %1433 = vmatprep.mubr.msk.f32.mxu1 %vm173_vm1, %v168_v16  ;;  %v1345_v16 = vld [vmem:[%s2136_s12] ss:$0 sm:$0xff] }
  0xe9   :  { %1434 = vmatmul.mubr.msk.f32.vlgmr.msra.gmra.mrb[0].mxu1 %vm173_vm1, %v169_v18  ;;  %v171_v23 = vmul.f32 %v165_v19, %v165_v19 }
  0xea   :  { %v170_v22 = vmul.f32 %v160_v21, %v160_v21  ;;  %1510 = vmatpush3.bf16.msra.mxu1 %v1507_v10 }
  0xeb   :  { %1516 = vmatprep.subr.bf16.mxu1 %v1515_v30 }
  0xec   :  { %1436 = vmatprep.mubr.msk.f32.mxu1 %vm173_vm1, %v170_v22 }
  0xed   :  { %1437 = vmatmul.mubr.msk.f32.gmra.mrb[2].mxu1 %vm173_vm1, %v171_v23  ;;  %vm1135_vm1 = vcmask 15360  }
  0xee   :  { %1443 = vmatprep.mubr.msk.f32.mxu1 %vm70_vm0, %v57_v2  ;;  %v1351_v2 = vld [vmem:[%s2135_s11 + $0x18] sm:$0xff] }
  0xef   :  { %v1523_v3 = vpack.c.bf16 %v1351_v2, %v1350_v1  ;;  %v984_v1 = vld [vmem:[%s2139_s15 + $0x80] sm:$0xff]  ;;  %v986_v2 = vld [vmem:[%s2139_s15 + $0x90] sm:$0xff] }
  0xf1   :  { %1444 = vmatmul.mubr.msk.f32.vlgmr.msra.gmra.mrb[4].mxu1 %vm70_vm0, %v58_v4  ;;  %v1340_v4 = vld [vmem:[%s2134_s10] ss:$0 sm:$0xff] }
  0xf2   :  { %1446 = vmatprep.mubr.msk.f32.mxu1 %vm70_vm0, %v59_v5  ;;  %1518 = vmatpush3.bf16.msra.mxu1 %v1515_v30 }
  0xf3   :  { %1465 = vmatprep.subr.mxu1 %v487_v44 }
  0xf5   :  { %1447 = vmatmul.mubr.msk.f32.gmra.mrb[6].mxu1 %vm70_vm0, %v60_v6 }
  0xf6   :  { %1466 = vmatpush3.msra.mxu1 %v487_v44  ;;  %v1633_v44 = vmov 0.0  }
  0xf7   :  { %1524 = vmatprep.subr.bf16.mxu1 %v1523_v3  ;;  %1245 = vst [vmem:[#allocation2 + $0x8] sm:$0xff] %v1633_v44  ;;  %1246 = vst [vmem:[#allocation2 + $0x10] sm:$0xff] %v1633_v44 }
  0xf8   :  { %1247 = vst [vmem:[#allocation2 + $0x18] sm:$0xff] %v1633_v44  ;;  %1248 = vst [vmem:[#allocation2 + $0x20] sm:$0xff] %v1633_v44 }
  0xf9   :  { %1249 = vst [vmem:[#allocation2 + $0x28] sm:$0xff] %v1633_v44  ;;  %1250 = vst [vmem:[#allocation2 + $0x30] sm:$0xff] %v1633_v44 }
  0xfa   :  { %1251 = vst [vmem:[#allocation2 + $0x38] sm:$0xff] %v1633_v44  ;;  %1252 = vst [vmem:[#allocation2 + $0x40] sm:$0xff] %v1633_v44 }
  0xfb   :  { %1253 = vst [vmem:[#allocation2 + $0x48] sm:$0xff] %v1633_v44  ;;  %1254 = vst [vmem:[#allocation2 + $0x50] sm:$0xff] %v1633_v44 }
  0xfc   :  { %1255 = vst [vmem:[#allocation2 + $0x58] sm:$0xff] %v1633_v44  ;;  %1256 = vst [vmem:[#allocation2 + $0x60] sm:$0xff] %v1633_v44 }
  0xfd   :  { %1257 = vst [vmem:[#allocation2 + $0x68] sm:$0xff] %v1633_v44  ;;  %1258 = vst [vmem:[#allocation2 + $0x70] sm:$0xff] %v1633_v44 }
  0xfe   :  { %1259 = vst [vmem:[#allocation2 + $0x78] sm:$0xff] %v1633_v44  ;;  %1260 = vst [vmem:[#allocation2 + $0x88] sm:$0xff] %v1633_v44 }
  0xff   :  { %1261 = vst [vmem:[#allocation2 + $0x90] sm:$0xff] %v1633_v44  ;;  %1262 = vst [vmem:[#allocation2 + $0x98] sm:$0xff] %v1633_v44 }
 0x100   :  { %1263 = vst [vmem:[#allocation2 + $0xa0] sm:$0xff] %v1633_v44  ;;  %1264 = vst [vmem:[#allocation2 + $0xa8] sm:$0xff] %v1633_v44 }
 0x101   :  { %1265 = vst [vmem:[#allocation2 + $0xb0] sm:$0xff] %v1633_v44  ;;  %1266 = vst [vmem:[#allocation2 + $0xb8] sm:$0xff] %v1633_v44 }
 0x102   :  { %1267 = vst [vmem:[#allocation2 + $0xc0] sm:$0xff] %v1633_v44  ;;  %1268 = vst [vmem:[#allocation2 + $0xc8] sm:$0xff] %v1633_v44 }
 0x103   :  { %1269 = vst [vmem:[#allocation2 + $0xd0] sm:$0xff] %v1633_v44  ;;  %1270 = vst [vmem:[#allocation2 + $0xd8] sm:$0xff] %v1633_v44 }
 0x104   :  { %1271 = vst [vmem:[#allocation2 + $0xe0] sm:$0xff] %v1633_v44  ;;  %1272 = vst [vmem:[#allocation2 + $0xe8] sm:$0xff] %v1633_v44 }
 0x105   :  { %1273 = vst [vmem:[#allocation2 + $0xf0] sm:$0xff] %v1633_v44  ;;  %1274 = vst [vmem:[#allocation2 + $0xf8] sm:$0xff] %v1633_v44 }
 0x106   :  { %1275 = vst [vmem:[#allocation2 + $0x108] sm:$0xff] %v1633_v44  ;;  %1276 = vst [vmem:[#allocation2 + $0x110] sm:$0xff] %v1633_v44 }
 0x107   :  { %1277 = vst [vmem:[#allocation2 + $0x118] sm:$0xff] %v1633_v44  ;;  %1278 = vst [vmem:[#allocation2 + $0x120] sm:$0xff] %v1633_v44 }
 0x108   :  { %1279 = vst [vmem:[#allocation2 + $0x128] sm:$0xff] %v1633_v44  ;;  %1280 = vst [vmem:[#allocation2 + $0x130] sm:$0xff] %v1633_v44 }
 0x109   :  { %1281 = vst [vmem:[#allocation2 + $0x138] sm:$0xff] %v1633_v44  ;;  %1282 = vst [vmem:[#allocation2 + $0x140] sm:$0xff] %v1633_v44 }
 0x10a   :  { %1283 = vst [vmem:[#allocation2 + $0x148] sm:$0xff] %v1633_v44  ;;  %1284 = vst [vmem:[#allocation2 + $0x150] sm:$0xff] %v1633_v44 }
 0x10b   :  { %1285 = vst [vmem:[#allocation2 + $0x158] sm:$0xff] %v1633_v44  ;;  %1286 = vst [vmem:[#allocation2 + $0x160] sm:$0xff] %v1633_v44 }
 0x10c   :  { %1287 = vst [vmem:[#allocation2 + $0x168] sm:$0xff] %v1633_v44  ;;  %1288 = vst [vmem:[#allocation2 + $0x170] sm:$0xff] %v1633_v44 }
 0x10d   :  { %1289 = vst [vmem:[#allocation2 + $0x178] sm:$0xff] %v1633_v44  ;;  %1290 = vst [vmem:[#allocation2 + $0x188] sm:$0xff] %v1633_v44 }
 0x10e   :  { %1291 = vst [vmem:[#allocation2 + $0x190] sm:$0xff] %v1633_v44  ;;  %1292 = vst [vmem:[#allocation2 + $0x198] sm:$0xff] %v1633_v44 }
 0x10f   :  { %1293 = vst [vmem:[#allocation2 + $0x1a0] sm:$0xff] %v1633_v44  ;;  %1294 = vst [vmem:[#allocation2 + $0x1a8] sm:$0xff] %v1633_v44 }
 0x110   :  { %1295 = vst [vmem:[#allocation2 + $0x1b0] sm:$0xff] %v1633_v44  ;;  %1296 = vst [vmem:[#allocation2 + $0x1b8] sm:$0xff] %v1633_v44 }
 0x111   :  { %1297 = vst [vmem:[#allocation2 + $0x1c0] sm:$0xff] %v1633_v44  ;;  %1298 = vst [vmem:[#allocation2 + $0x1c8] sm:$0xff] %v1633_v44 }
 0x112   :  { %1299 = vst [vmem:[#allocation2 + $0x1d0] sm:$0xff] %v1633_v44  ;;  %1300 = vst [vmem:[#allocation2 + $0x1d8] sm:$0xff] %v1633_v44 }
 0x113   :  { %1301 = vst [vmem:[#allocation2 + $0x1e0] sm:$0xff] %v1633_v44  ;;  %1302 = vst [vmem:[#allocation2 + $0x1e8] sm:$0xff] %v1633_v44 }
 0x114   :  { %1303 = vst [vmem:[#allocation2 + $0x1f0] sm:$0xff] %v1633_v44  ;;  %1304 = vst [vmem:[#allocation2 + $0x1f8] sm:$0xff] %v1633_v44 }
 0x1bc   :  { %v1782_v31 = vpop.f32.mrb[0].mxu1 }
 0x1bd   :  { %v1784_v32 = vpop.f32.mrb[1].mxu1 }
 0x1c0   :  { %v1786_v33 = vpop.f32.mrb[2].mxu1 }
 0x1c1   :  { %v1788_v34 = vpop.f32.mrb[3].mxu1 }
 0x1c4   :  { %v1445_v36 = vpop.f32.mrb[4].mxu1 }
 0x1c5   :  { %v346_v37 = vpop.f32.mrb[5].mxu1  ;;  %v352_v39 = vadd.f32 %v1445_v36, %v1330_v35 }
 0x1c6   :  { %v347_v38 = vadd.f32 %v1330_v35, %v346_v37  ;;  %v1842_v37 = vld [vmem:[%s2139_s15 + $0x8] sm:$0xff] }
 0x1c8   :  { %v1448_v40 = vpop.f32.mrb[6].mxu1  ;;  %1455 = vmatprep.mubr.msk.f32.mxu0 %vm375_vm2, %v347_v38  ;;  %v1847_v38 = vld [vmem:[%s2139_s15 + $0x18] sm:$0xff] }
 0x1c9   :  { %v362_v41 = vadd.f32 %v1448_v40, %v1330_v35  ;;  %v356_v42 = vpop.f32.mrb[7].mxu1  ;;  %1456 = vmatmul.mubr.msk.f32.vlgmr.msra.gmra.mrb[4].mxu0 %vm375_vm2, %v352_v39  ;;  %v1852_v39 = vld [vmem:[%s2139_s15] sm:$0xff]  ;;  %v1531_v40 = vpack.c.bf16 %v1847_v38, %v1842_v37 }
 0x1ca   :  { %v357_v43 = vadd.f32 %v1330_v35, %v356_v42  ;;  %1522 = vmatpush3.bf16.msra.mxu0 %v1519_v47  ;;  %v1864_v42 = vld [vmem:[%s2139_s15 + $0x28] sm:$0xff]  ;;  %v972_v47 = vld [vmem:[%s2139_s15 + $0x20] sm:$0xff] }
 0x1cb   :  { %1528 = vmatprep.subr.bf16.mxu0 %v1527_v15 }
 0x1cc   :  { %1458 = vmatprep.mubr.msk.f32.mxu0 %vm375_vm2, %v357_v43  ;;  %v1869_v43 = vld [vmem:[%s2139_s15 + $0x38] sm:$0xff] }
 0x1cd   :  { %1459 = vmatmul.mubr.msk.f32.gmra.mrb[6].mxu0 %vm375_vm2, %v362_v41  ;;  %v1859_v41 = vld [vmem:[%s2139_s15 + $0x10] sm:$0xff]  ;;  %v1535_v46 = vpack.c.bf16 %v1869_v43, %v1864_v42 }
 0x1ce   :  { %v1533_v45 = vpack.c.bf16 %v1859_v41, %v1852_v39 }
 0x29c   :  { %v1457_v49 = vpop.f32.mrb[4].mxu0 }
 0x29d   :  { %v460_v50 = vadd.f32 %v1457_v49, %v1335_v48  ;;  %v454_v51 = vpop.f32.mrb[5].mxu0  ;;  %v977_v49 = vld [vmem:[%s2139_s15 + $0x48] sm:$0xff] }
 0x29e   :  { %v455_v52 = vadd.f32 %v1335_v48, %v454_v51 }
 0x29f   :  { %v478_v53 = vmul.f32 0.2, %v460_v50  ;;  %vm474_vm3 = vcmp.gt.f32.partialorder %v460_v50, 0.0 }
 0x2a0   :  { %vm473_vm4 = vcmp.gt.f32.partialorder %v455_v52, 0.0  ;;  %v477_v54 = vmul.f32 0.2, %v455_v52  ;;  %v1460_v55 = vpop.f32.mrb[6].mxu0 }
 0x2a1   :  { %v470_v56 = vadd.f32 %v1460_v55, %v1335_v48  ;;  %v464_v57 = vpop.f32.mrb[7].mxu0  ;;  %v482_v60 = vsel %vm474_vm3, %v460_v50, %v478_v53  ;;  %v979_v50 = vld [vmem:[%s2139_s15 + $0x58] sm:$0xff]  ;;  %v976_v53 = vld [vmem:[%s2139_s15 + $0x40] sm:$0xff]  ;;  %v981_v55 = vld [vmem:[%s2139_s15 + $0x68] sm:$0xff] }
 0x2a2   :  { %v465_v58 = vadd.f32 %v1335_v48, %v464_v57  ;;  %v481_v59 = vsel %vm473_vm4, %v455_v52, %v477_v54  ;;  %v974_v48 = vld [vmem:[%s2139_s15 + $0x30] sm:$0xff]  ;;  %v1539_v52 = vpack.c.bf16 %v979_v50, %v977_v49  ;;  %v1119_v49 = vld [vmem:[%s2140_s16 + $0x8] sm:$0xff] }
 0x2a3   :  { %v480_v61 = vmul.f32 0.2, %v470_v56  ;;  %1467 = vmatprep.mubr.msk.f32.mxu1 %vm375_vm2, %v481_v59  ;;  %vm476_vm5 = vcmp.gt.f32.partialorder %v470_v56, 0.0  ;;  %v1537_v51 = vpack.c.bf16 %v974_v48, %v972_v47  ;;  %v978_v54 = vld [vmem:[%s2139_s15 + $0x50] sm:$0xff]  ;;  %v980_v59 = vld [vmem:[%s2139_s15 + $0x60] sm:$0xff] }
 0x2a4   :  { %vm475_vm6 = vcmp.gt.f32.partialorder %v465_v58, 0.0  ;;  %v479_v62 = vmul.f32 0.2, %v465_v58  ;;  %1468 = vmatmul.mubr.msk.f32.vlgmr.msra.gmra.mrb[8].mxu1 %vm375_vm2, %v482_v60  ;;  %v1541_v57 = vpack.c.bf16 %v978_v54, %v976_v53  ;;  %v982_v60 = vld [vmem:[%s2139_s15 + $0x70] sm:$0xff]  ;;  %v1118_v48 = vld [vmem:[%s2140_s16] sm:$0xff]  ;;  %v1121_v54 = vld [vmem:[%s2140_s16 + $0x18] sm:$0xff] }
 0x2a5   :  { %v484_v0 = vsel %vm476_vm5, %v470_v56, %v480_v61  ;;  %1526 = vmatpush3.bf16.msra.mxu1 %v1523_v3  ;;  %v983_v56 = vld [vmem:[%s2139_s15 + $0x78] sm:$0xff]  ;;  %v985_v61 = vld [vmem:[%s2139_s15 + $0x88] sm:$0xff]  ;;  %v1120_v50 = vld [vmem:[%s2140_s16 + $0x10] sm:$0xff]  ;;  %v1564_v53 = vpack.c.bf16 %v1119_v49, %v1118_v48 }
 0x2a6   :  { %v483_v63 = vsel %vm475_vm6, %v465_v58, %v479_v62  ;;  %1532 = vmatprep.subr.bf16.mxu1 %v1531_v40  ;;  %v1543_v58 = vpack.c.bf16 %v983_v56, %v981_v55  ;;  %v987_v62 = vld [vmem:[%s2139_s15 + $0x98] sm:$0xff]  ;;  %v989_v3 = vld [vmem:[%s2139_s15 + $0xa8] sm:$0xff]  ;;  %v1567_v56 = vpack.c.bf16 %v1121_v54, %v1120_v50 }
 0x2a7   :  { %1470 = vmatprep.mubr.msk.f32.mxu1 %vm375_vm2, %v483_v63  ;;  %v1545_v63 = vpack.c.bf16 %v982_v60, %v980_v59  ;;  %v1124_v60 = vld [vmem:[%s2140_s16 + $0x30] sm:$0xff] }
 0x2a8   :  { %1471 = vmatmul.mubr.msk.f32.gmra.mrb[10].mxu1 %vm375_vm2, %v484_v0  ;;  %v1547_v0 = vpack.c.bf16 %v987_v62, %v985_v61  ;;  %v1125_v61 = vld [vmem:[%s2140_s16 + $0x38] sm:$0xff] }
 0x2a9   :  { %v1573_v62 = vpack.c.bf16 %v1125_v61, %v1124_v60 }
 0x377   :  { %v1469_v5 = vpop.f32.mrb[8].mxu1 }
 0x378   :  { %v573_v6 = vpop.f32.mrb[9].mxu1  ;;  %v579_v8 = vadd.f32 %v1469_v5, %v1340_v4  ;;  %v1549_v5 = vpack.c.bf16 %v986_v2, %v984_v1  ;;  %v1128_v2 = vld [vmem:[%s2140_s16 + $0x50] sm:$0xff] }
 0x379   :  { %v574_v7 = vadd.f32 %v1340_v4, %v573_v6 }
 0x37b   :  { %v1472_v9 = vpop.f32.mrb[10].mxu1  ;;  %1477 = vmatprep.mubr.msk.f32.mxu0 %vm70_vm0, %v574_v7  ;;  %v988_v7 = vld [vmem:[%s2139_s15 + $0xa0] sm:$0xff] }
 0x37c   :  { %v583_v10 = vpop.f32.mrb[11].mxu1  ;;  %1478 = vmatmul.mubr.msk.f32.vlgmr.msra.gmra.mrb[8].mxu0 %vm70_vm0, %v579_v8  ;;  %v589_v12 = vadd.f32 %v1472_v9, %v1340_v4  ;;  %v990_v8 = vld [vmem:[%s2139_s15 + $0xb0] sm:$0xff]  ;;  %v993_v9 = vld [vmem:[%s2139_s15 + $0xc8] sm:$0xff] }
 0x37d   :  { %v584_v11 = vadd.f32 %v1340_v4, %v583_v10  ;;  %1530 = vmatpush3.bf16.msra.mxu0 %v1527_v15  ;;  %v991_v4 = vld [vmem:[%s2139_s15 + $0xb8] sm:$0xff]  ;;  %v997_v15 = vld [vmem:[%s2139_s15 + $0xe8] sm:$0xff] }
 0x37e   :  { %v1551_v6 = vpack.c.bf16 %v991_v4, %v989_v3  ;;  %v995_v10 = vld [vmem:[%s2139_s15 + $0xd8] sm:$0xff] }
 0x37f   :  { %1480 = vmatprep.mubr.msk.f32.mxu0 %vm70_vm0, %v584_v11  ;;  %v1553_v11 = vpack.c.bf16 %v990_v8, %v988_v7  ;;  %v1129_v3 = vld [vmem:[%s2140_s16 + $0x58] sm:$0xff]  ;;  %v1132_v8 = vld [vmem:[%s2140_s16 + $0x70] sm:$0xff] }
 0x380   :  { %1481 = vmatmul.mubr.msk.f32.gmra.mrb[10].mxu0 %vm70_vm0, %v589_v12  ;;  %v1555_v12 = vpack.c.bf16 %v995_v10, %v993_v9  ;;  %v1579_v4 = vpack.c.bf16 %v1129_v3, %v1128_v2  ;;  %v1133_v9 = vld [vmem:[%s2140_s16 + $0x78] sm:$0xff] }
 0x381   :  { %v1585_v10 = vpack.c.bf16 %v1133_v9, %v1132_v8 }
 0x44f   :  { %v1479_v17 = vpop.f32.mrb[8].mxu0 }
 0x450   :  { %v685_v18 = vadd.f32 %v1479_v17, %v1345_v16  ;;  %v679_v19 = vpop.f32.mrb[9].mxu0  ;;  %v1557_v17 = vpack.c.bf16 %v994_v14, %v992_v13 }
 0x451   :  { %v680_v20 = vadd.f32 %v1345_v16, %v679_v19  ;;  %v996_v19 = vld [vmem:[%s2139_s15 + $0xe0] sm:$0xff] }
 0x452   :  { %v703_v21 = vmul.f32 0.2, %v685_v18  ;;  %vm699_vm7 = vcmp.gt.f32.partialorder %v685_v18, 0.0 }
 0x453   :  { %vm698_vm8 = vcmp.gt.f32.partialorder %v680_v20, 0.0  ;;  %v702_v22 = vmul.f32 0.2, %v680_v20  ;;  %v1482_v23 = vpop.f32.mrb[10].mxu0 }
 0x454   :  { %v695_v24 = vadd.f32 %v1482_v23, %v1345_v16  ;;  %v689_v25 = vpop.f32.mrb[11].mxu0  ;;  %v707_v28 = vsel %vm699_vm7, %v685_v18, %v703_v21  ;;  %v965_v23 = vld [vmem:[%s2147_s8 + $0x8] sm:$0xff] }
 0x455   :  { %v690_v26 = vadd.f32 %v1345_v16, %v689_v25  ;;  %v706_v27 = vsel %vm698_vm8, %v680_v20, %v702_v22  ;;  %v999_v16 = vld [vmem:[%s2139_s15 + $0xf8] sm:$0xff]  ;;  %v998_v20 = vld [vmem:[%s2139_s15 + $0xf0] sm:$0xff]  ;;  %v964_v22 = vld [vmem:[%s2147_s8] sm:$0xff] }
 0x456   :  { %v705_v29 = vmul.f32 0.2, %v695_v24  ;;  %1487 = vmatprep.mubr.msk.f32.mxu1 %vm70_vm0, %v706_v27  ;;  %vm701_vm9 = vcmp.gt.f32.partialorder %v695_v24, 0.0  ;;  %v1559_v18 = vpack.c.bf16 %v999_v16, %v997_v15  ;;  %v1561_v21 = vpack.c.bf16 %v998_v20, %v996_v19  ;;  %v967_v25 = vld [vmem:[%s2147_s8 + $0x18] sm:$0xff] }
 0x457   :  { %vm700_vm10 = vcmp.gt.f32.partialorder %v690_v26, 0.0  ;;  %v704_v30 = vmul.f32 0.2, %v690_v26  ;;  %1488 = vmatmul.mubr.msk.f32.vlgmr.msra.gmra.mrb[12].mxu1 %vm70_vm0, %v707_v28 }
 0x458   :  { %v709_v36 = vsel %vm701_vm9, %v695_v24, %v705_v29  ;;  %1534 = vmatpush1.bf16.msra.mxu1 %v1533_v45  ;;  %v966_v24 = vld [vmem:[%s2147_s8 + $0x10] sm:$0xff] }
 0x459   :  { %v708_v35 = vsel %vm700_vm10, %v690_v26, %v704_v30  ;;  %1536 = vmatprep.subr.bf16.mxu1 %v1535_v46  ;;  %v1353_v26 = vld [vmem:[%s2136_s12 + $0x1] ss:$0 sm:$0xff] }
 0x45a   :  { %1490 = vmatprep.mubr.msk.f32.mxu1 %vm70_vm0, %v708_v35 }
 0x45b   :  { %1491 = vmatmul.mubr.msk.f32.gmra.mrb[14].mxu1 %vm70_vm0, %v709_v36 }
 0x45c   :  { %1064 = vmatprep.mubr.f32.mxu1 %v1633_v44  ;;  %1538 = vmatpush1.bf16.msra.mxu1 %v1537_v51 }
 0x45d   :  { %1540 = vmatprep.subr.bf16.mxu1 %v1539_v52  ;;  %v1634_v52 = vmov 0.0|0.0  }
 0x45e   :  { %1563 = vmatprep.subr.bf16.mxu0 %v1634_v52 }
 0x460   :  { %1542 = vmatpush1.bf16.msra.mxu1 %v1541_v57  ;;  %v1122_v57 = vld [vmem:[%s2140_s16 + $0x20] sm:$0xff] }
 0x461   :  { %1544 = vmatprep.subr.bf16.mxu1 %v1543_v58  ;;  %v1123_v58 = vld [vmem:[%s2140_s16 + $0x28] sm:$0xff] }
 0x462   :  { %v1570_v59 = vpack.c.bf16 %v1123_v58, %v1122_v57 }
 0x464   :  { %1546 = vmatpush1.bf16.msra.mxu1 %v1545_v63  ;;  %v1126_v63 = vld [vmem:[%s2140_s16 + $0x40] sm:$0xff] }
 0x465   :  { %1548 = vmatprep.subr.bf16.mxu1 %v1547_v0  ;;  %v1127_v0 = vld [vmem:[%s2140_s16 + $0x48] sm:$0xff] }
 0x466   :  { %v1576_v1 = vpack.c.bf16 %v1127_v0, %v1126_v63 }
 0x468   :  { %1550 = vmatpush1.bf16.msra.mxu1 %v1549_v5  ;;  %v1130_v5 = vld [vmem:[%s2140_s16 + $0x60] sm:$0xff] }
 0x469   :  { %1552 = vmatprep.subr.bf16.mxu1 %v1551_v6  ;;  %v1131_v6 = vld [vmem:[%s2140_s16 + $0x68] sm:$0xff] }
 0x46a   :  { %v1582_v7 = vpack.c.bf16 %v1131_v6, %v1130_v5 }
 0x46c   :  { %1554 = vmatpush1.bf16.msra.mxu1 %v1553_v11  ;;  %v1358_v11 = vld [vmem:[%s2138_s14] ss:$0 sm:$0xff] }
 0x46d   :  { %1556 = vmatprep.subr.bf16.mxu1 %v1555_v12 }
 0x470   :  { %1558 = vmatpush1.bf16.msra.mxu1 %v1557_v17 }
 0x471   :  { %1560 = vmatprep.subr.bf16.mxu1 %v1559_v18 }
 0x474   :  { %1562 = vmatpush1.bf16.msra.mxu1 %v1561_v21 }
 0x477   :  { %1065 = vmatmul.mubr.f32.vlgmr.msra.gmra.mrb[16].mxu1 %v964_v22 }
 0x478   :  { %1070 = vmatprep.mubr.f32.mxu1 %v1633_v44 }
 0x47b   :  { %1071 = vmatmul.mubr.f32.gmra.mrb[18].mxu1 %v965_v23 }
 0x47c   :  { %1076 = vmatprep.mubr.f32.mxu1 %v1633_v44 }
 0x47f   :  { %1077 = vmatmul.mubr.f32.gmra.mrb[20].mxu1 %v966_v24 }
 0x480   :  { %1082 = vmatprep.mubr.f32.mxu1 %v1633_v44 }
 0x483   :  { %1083 = vmatmul.mubr.f32.gmra.mrb[22].mxu1 %v967_v25 }
 0x52a   :  { %v1489_v27 = vpop.f32.mrb[12].mxu1 }
 0x52b   :  { %v805_v28 = vadd.f32 %v1489_v27, %v1353_v26  ;;  %v799_v29 = vpop.f32.mrb[13].mxu1 }
 0x52c   :  { %v800_v30 = vadd.f32 %v1353_v26, %v799_v29 }
 0x52d   :  { %v823_v35 = vmul.f32 0.2, %v805_v28  ;;  %vm819_vm11 = vcmp.gt.f32.partialorder %v805_v28, 0.0 }
 0x52e   :  { %vm818_vm12 = vcmp.gt.f32.partialorder %v800_v30, 0.0  ;;  %v822_v36 = vmul.f32 0.2, %v800_v30  ;;  %v1492_v37 = vpop.f32.mrb[14].mxu1 }
 0x52f   :  { %v815_v38 = vadd.f32 %v1492_v37, %v1353_v26  ;;  %v809_v39 = vpop.f32.mrb[15].mxu1  ;;  %v827_v42 = vsel %vm819_vm11, %v805_v28, %v823_v35  ;;  %v1134_v35 = vld [vmem:[%s2140_s16 + $0x80] sm:$0x3]  ;;  %s1636_s16 = smov [#allocation2]  }
 0x530   :  { %v810_v40 = vadd.f32 %v1353_v26, %v809_v39  ;;  %v826_v41 = vsel %vm818_vm12, %v800_v30, %v822_v36  ;;  %s1310_s2 = sshll.u32 %s1636_s16, 4  ;;  %s1311_s2 = int_to_ptr.vmem [resolvable:$true] %s1310_s2 }
 0x531   :  { %v825_v43 = vmul.f32 0.2, %v815_v38  ;;  %1497 = vmatprep.mubr.msk.f32.mxu0 %vm70_vm0, %v826_v41  ;;  %vm821_vm13 = vcmp.gt.f32.partialorder %v815_v38, 0.0  ;;  %s1609_s7 = scalar_lea.vmem %s1311_s2, 8192  ;;  %p1614_p1 = scmp.lt.s32.totalorder %s1311_s2, %s1311_s2 }
 0x532   :  { %vm820_vm14 = vcmp.gt.f32.partialorder %v810_v40, 0.0  ;;  %v824_v45 = vmul.f32 0.2, %v810_v40  ;;  %1498 = vmatmul.mubr.msk.f32.vlgmr.msra.gmra.mrb[12].mxu0 %vm70_vm0, %v827_v42  ;;  %p1610_p0 = scmp.ne.s32.totalorder %s1311_s2, %s1609_s7  ;;  %p1615_p2 = scmp.lt.s32.totalorder %s1609_s7, %s1609_s7 }
 0x533   :  { %v829_v47 = vsel %vm821_vm13, %v815_v38, %v825_v43  ;;  %1565 = vmatpush1.bf16.msra.mxu0 %v1564_v53 }
 0x534   :  { %v828_v46 = vsel %vm820_vm14, %v810_v40, %v824_v45  ;;  %1566 = vmatprep.subr.bf16.mxu0 %v1634_v52  ;;  %p1616_p3 = por %p1615_p2, %p1614_p1 }
 0x535   :  { %1500 = vmatprep.mubr.msk.f32.mxu0 %vm70_vm0, %v828_v46 }
 0x536   :  { %1501 = vmatmul.mubr.msk.f32.gmra.mrb[14].mxu0 %vm70_vm0, %v829_v47  ;;  %vm1105_vm0 = vcmask 531456   ;;  %p1617_p4 = pnand %p1616_p3, %p1610_p0 }
 0x537   :  { %1568 = vmatpush1.bf16.msra.mxu0 %v1567_v56 }
 0x538   :  { %1569 = vmatprep.subr.bf16.mxu0 %v1634_v52 }
 0x53b   :  { %1571 = vmatpush1.bf16.msra.mxu0 %v1570_v59 }
 0x53c   :  { %1572 = vmatprep.subr.bf16.mxu0 %v1634_v52 }
 0x53f   :  { %1574 = vmatpush1.bf16.msra.mxu0 %v1573_v62 }
 0x540   :  { %1575 = vmatprep.subr.bf16.mxu0 %v1634_v52 }
 0x543   :  { %1577 = vmatpush1.bf16.msra.mxu0 %v1576_v1 }
 0x544   :  { %1578 = vmatprep.subr.bf16.mxu0 %v1634_v52 }
 0x547   :  { %1580 = vmatpush1.bf16.msra.mxu0 %v1579_v4 }
 0x548   :  { %1581 = vmatprep.subr.bf16.mxu0 %v1634_v52 }
 0x54a   :  { %v2048_v51 = vpop.f32.mrb[16].mxu1 }
 0x54b   :  { %v2053_v55 = vpop.f32.mrb[17].mxu1  ;;  %1583 = vmatpush1.bf16.msra.mxu0 %v1582_v7 }
 0x54c   :  { %1584 = vmatprep.subr.bf16.mxu0 %v1634_v52 }
 0x54e   :  { %v1072_v28 = vpop.f32.mrb[18].mxu1 }
 0x54f   :  { %1586 = vmatpush1.bf16.msra.mxu0 %v1585_v10  ;;  %v1074_v30 = vpop.f32.mrb[19].mxu1 }
 0x550   :  { %1184 = vmatprep.subr.mxu0 %v1633_v44 }
 0x552   :  { %v1078_v38 = vpop.f32.mrb[20].mxu1 }
 0x553   :  { %1367 = vmatpush1.msk.msra.mxu0 %vm1148_vm15, %v1134_v35  ;;  %v1080_v39 = vpop.f32.mrb[21].mxu1 }
 0x556   :  { %v1084_v40 = vpop.f32.mrb[22].mxu1 }
 0x557   :  { %v1086_v41 = vpop.f32.mrb[23].mxu1 }
 0x605   :  { %v1499_v12 = vpop.f32.mrb[12].mxu0 }
 0x606   :  { %v923_v13 = vadd.f32 %v1499_v12, %v1358_v11  ;;  %v917_v14 = vpop.f32.mrb[13].mxu0 }
 0x607   :  { %v918_v15 = vadd.f32 %v1358_v11, %v917_v14 }
 0x608   :  { %v1364_v16 = vmul.f32 -1.442695, %v923_v13 }
 0x609   :  { %v1363_v17 = vmul.f32 -1.442695, %v918_v15  ;;  %v1502_v18 = vpop.f32.mrb[14].mxu0 }
 0x60a   :  { %1593 = vpow2.f32 %v1364_v16  ;;  %v933_v19 = vadd.f32 %v1502_v18, %v1358_v11  ;;  %v927_v20 = vpop.f32.mrb[15].mxu0 }
 0x60b   :  { %1595 = vpow2.f32 %v1363_v17  ;;  %v928_v21 = vadd.f32 %v1358_v11, %v927_v20 }
 0x60c   :  { %v1366_v22 = vmul.f32 -1.442695, %v933_v19 }
 0x60d   :  { %v1365_v23 = vmul.f32 -1.442695, %v928_v21 }
 0x60e   :  { %1597 = vpow2.f32 %v1366_v22 }
 0x60f   :  { %1599 = vpow2.f32 %v1365_v23 }
 0x614   :  { %v1594_v44 = vpop.eup %1593 }
 0x615   :  { %v1596_v24 = vpop.eup %1595  ;;  %v949_v25 = vadd.f32 1.0, %v1594_v44 }
 0x616   :  { %v948_v26 = vadd.f32 1.0, %v1596_v24 }
 0x618   :  { %v1598_v27 = vpop.eup %1597  ;;  %1601 = vrcp.f32 %v948_v26 }
 0x619   :  { %v1600_v29 = vpop.eup %1599  ;;  %1603 = vrcp.f32 %v949_v25  ;;  %v951_v36 = vadd.f32 1.0, %v1598_v27 }
 0x61a   :  { %v950_v37 = vadd.f32 1.0, %v1600_v29 }
 0x61c   :  { %1605 = vrcp.f32 %v950_v37 }
 0x61d   :  { %1607 = vrcp.f32 %v951_v36 }
 0x622   :  { %v1602_v42 = vpop.eup %1601 }
 0x623   :  { %v960_v43 = vmul.f32 %v1602_v42, %v1602_v42  ;;  %v1604_v45 = vpop.eup %1603 }
 0x624   :  { %v961_v48 = vmul.f32 %v1604_v45, %v1604_v45 }
 0x625   :  { %1093 = vrot.lane.b32.xlu0 %v960_v43, %s1635_s1 }
 0x626   :  { %v1606_v46 = vpop.eup %1605 }
 0x627   :  { %v962_v47 = vmul.f32 %v1606_v46, %v1606_v46  ;;  %v1608_v49 = vpop.eup %1607 }
 0x628   :  { %v963_v50 = vmul.f32 %v1608_v49, %v1608_v49 }
 0x629   :  { %1097 = vrot.lane.b32.xlu1 %v962_v47, %s1635_s1  ;;  %1095 = vrot.lane.b32.xlu0 %v961_v48, %s1635_s1 }
 0x62d   :  { %1099 = vrot.lane.b32.xlu1 %v963_v50, %s1635_s1 }
 0x697   :  { %v1094_v52 = vpop.permute.xlu0 %1093 }
 0x698   :  { %v1106_v53 = vsel %vm1105_vm0, %v960_v43, %v1094_v52  ;;  %v1111_v54 = vmul.f32 %v1094_v52, %v2053_v55 }
 0x699   :  { %v1110_v56 = vmul.f32 %v1106_v53, %v2048_v51 }
 0x69a   :  { %1368 = vmatprep.mubr.msk.f32.mxu0 %vm1135_vm1, %v1111_v54 }
 0x69b   :  { %v1098_v57 = vpop.permute.xlu1 %1097  ;;  %1217 = vmatmul.mubr.f32.vlgmr.msra.gmra.mrb[16].mxu0 %v1110_v56  ;;  %v1096_v58 = vpop.permute.xlu0 %1095 }
 0x69c   :  { %v1107_v59 = vsel %vm1105_vm0, %v961_v48, %v1096_v58  ;;  %v1113_v60 = vmul.f32 %v1096_v58, %v1074_v30  ;;  %v1108_v62 = vsel %vm1105_vm0, %v962_v47, %v1098_v57  ;;  %v1115_v63 = vmul.f32 %v1098_v57, %v1080_v39 }
 0x69d   :  { %v1112_v61 = vmul.f32 %v1107_v59, %v1072_v28  ;;  %v1114_v55 = vmul.f32 %v1108_v62, %v1078_v38 }
 0x69e   :  { %1369 = vmatprep.mubr.msk.f32.mxu0 %vm1135_vm1, %v1113_v60 }
 0x69f   :  { %v1100_v0 = vpop.permute.xlu1 %1099  ;;  %1222 = vmatmul.mubr.f32.gmra.mrb[18].mxu0 %v1112_v61 }
 0x6a0   :  { %1370 = vmatprep.mubr.msk.f32.mxu0 %vm1135_vm1, %v1115_v63  ;;  %v1109_v51 = vsel %vm1105_vm0, %v963_v50, %v1100_v0  ;;  %v1117_v1 = vmul.f32 %v1100_v0, %v1086_v41 }
 0x6a1   :  { %v1116_v2 = vmul.f32 %v1109_v51, %v1084_v40 }
 0x6a3   :  { %1227 = vmatmul.mubr.f32.gmra.mrb[20].mxu0 %v1114_v55 }
 0x6a4   :  { %1371 = vmatprep.mubr.msk.f32.mxu0 %vm1135_vm1, %v1117_v1 }
 0x6a7   :  { %1232 = vmatmul.mubr.f32.gmra.mrb[22].mxu0 %v1116_v2 }
 0x76e   :  { %v1218_v3 = vpop.f32.mrb[16].mxu0 }
 0x76f   :  { %v1237_v4 = vmul.f32 %v1218_v3, %v1784_v32  ;;  %v1220_v5 = vpop.f32.mrb[17].mxu0 }
 0x771   :  { %1241 = vst [vmem:[#allocation2] sm:$0xff] %v1237_v4 }
 0x772   :  { %v1223_v6 = vpop.f32.mrb[18].mxu0 }
 0x773   :  { %v1238_v7 = vmul.f32 %v1782_v31, %v1223_v6  ;;  %v1225_v8 = vpop.f32.mrb[19].mxu0 }
 0x775   :  { %1242 = vst [vmem:[#allocation2 + $0x80] sm:$0xff] %v1238_v7 }
 0x776   :  { %v1228_v9 = vpop.f32.mrb[20].mxu0 }
 0x777   :  { %v1239_v10 = vmul.f32 %v1228_v9, %v1788_v34  ;;  %v1230_v11 = vpop.f32.mrb[21].mxu0 }
 0x779   :  { %1243 = vst [vmem:[#allocation2 + $0x100] sm:$0xff] %v1239_v10 }
 0x77a   :  { %v1233_v12 = vpop.f32.mrb[22].mxu0 }
 0x77b   :  { %v1240_v13 = vmul.f32 %v1786_v33, %v1233_v12  ;;  %v1235_v14 = vpop.f32.mrb[23].mxu0 }
 0x77d   :  { %1244 = vst [vmem:[#allocation2 + $0x180] sm:$0xff] %v1240_v13 }
 0x77e   :  { %1620 = shalt.err (!%p1617_p4)
}
 0x77f   :  { %s1621_s22 = scalar_lea.hbm %s2141_s17, 8192 }
 0x780   :  { %p1622_p5 = scmp.ne.s32.totalorder %s2141_s17, %s1621_s22  ;;  %p1625_p6 = scmp.lt.u32.totalorder %s1621_s22, %s2141_s17 }
 0x782   :  { %p1627_p7 = pnand %p1625_p6, %p1622_p5 }
 0x784   :  { %1630 = shalt.err (!%p1627_p7)
}
 0x785   :  { %s1637_s26 = smov 2048   ;;  %s1638_s27 = smov 128  }
 0x786   :  { %1316 = dma.vmem_to_hbm [thread:$0]  %s1311_s2, 8192, %s2141_s17, [#allocation3], %s1637_s26, %s1637_s26, %s1638_s27  }
 0x787   :  { %1631 = dma.done.wait [#allocation3], 8192  }
 0x788   :  { %1632 = vsyncadd [#allocation3], 4294959104 }
 0x789   :  { %1320 = vsyncpa [#allocation3], 1 }

</bundles_post_ra>
